<compile_context>
chip_gen: v7x
topology: tpu7x:2x2x1
jax: 0.10.0
libtpu: 0.0.40
codegen_flags: <defaults>
</compile_context>

<pallas_src>
import functools

import jax
import jax.numpy as jnp
from jax.experimental import pallas as pl
from jax.experimental.pallas import tpu as pltpu

_LANES = 128


# ----------------------------------------------------------------------------
# Tile planning (generation aware)
# ----------------------------------------------------------------------------
def _vmem_limits():
    """Return (tile_budget_bytes, vmem_limit_bytes) for this TPU generation."""
    try:
        cap = int(pltpu.get_tpu_info().vmem_capacity_bytes)
    except Exception:
        cap = 64 * 1024 * 1024  # v7x-safe fallback
    # ~45 MiB scoped on v7x (64 MiB VMEM), 64 MiB on v5e/v6e (128 MiB VMEM).
    vmem_limit = min(int(cap * 0.70), 64 * 1024 * 1024)
    tile_budget = int(vmem_limit * 0.75)
    return tile_budget, vmem_limit


def _plan(hw, num_classes, itemsize, max_pixels_per_step=262144):
    """Pick padded pixel count, pixel-row count R and sublane tile S.

    Per grid step we hold (double-buffered): logits (C, S, 128), labels
    (S, 128) int32, loss (S, 128) f32, i.e. 2*128*(C*itemsize + 4 + 4) bytes
    per pixel-row of 128 pixels.
    """
    tile_budget, vmem_limit = _vmem_limits()
    bytes_per_row = 2 * _LANES * (num_classes * itemsize + 4 + 4)
    s_cap = max(8, tile_budget // bytes_per_row)
    s_cap = min(s_cap, max_pixels_per_step // _LANES)

    def pick(hw_pad):
        rows = hw_pad // _LANES
        if rows <= s_cap:
            return rows, rows  # single block per image along the pixel axis
        s = (s_cap // 8) * 8
        while s >= 8:
            if rows % s == 0:
                return rows, s
            s -= 8
        return rows, None

    hw_pad = ((hw + _LANES - 1) // _LANES) * _LANES
    rows, s_tile = pick(hw_pad)
    if s_tile is None:
        # Pad pixels to a multiple of 8*128 so a multiple-of-8 divisor exists.
        hw_pad = ((hw + 8 * _LANES - 1) // (8 * _LANES)) * (8 * _LANES)
        rows, s_tile = pick(hw_pad)
        if s_tile is None:  # rows % 8 == 0 here, so S=8 always divides
            s_tile = 8
    return hw_pad, rows, s_tile, vmem_limit


def _prep_inputs(logits_nchw, labels_n):
    """(N,C,H,W) logits + (N,H,W) int labels -> class-major padded views."""
    n, c, h, w = logits_nchw.shape
    hw = h * w
    itemsize = jnp.dtype(logits_nchw.dtype).itemsize
    hw_pad, rows, s_tile, vmem_limit = _plan(hw, c, itemsize)

    logits = logits_nchw.reshape(n, c, hw)
    labels = labels_n.reshape(n, hw).astype(jnp.int32)
    if hw_pad != hw:
        pad = hw_pad - hw
        logits = jnp.pad(logits, ((0, 0), (0, 0), (0, pad)))
        labels = jnp.pad(labels, ((0, 0), (0, pad)))
    logits = logits.reshape(n, c, rows, _LANES)
    labels = labels.reshape(n, rows, _LANES)
    return logits, labels, n, c, hw, hw_pad, rows, s_tile, vmem_limit


# ----------------------------------------------------------------------------
# Kernels
# ----------------------------------------------------------------------------
def _ce_block(logits_ref, labels_ref):
    """Per-pixel cross entropy for one block.

    logits_ref : (1, C, S, 128) tile (class-major, input dtype)
    labels_ref : (1, S, 128) int32 class indices
    returns    : (S, 128) f32 raw CE
    """
    num_classes = logits_ref.shape[1]
    lab = labels_ref[0]                                   # (S, 128) int32

    x0 = logits_ref[0, 0]                                 # (S, 128) input dtype
    m = x0
    for c in range(1, num_classes):                       # class max: VPU only
        m = jnp.maximum(m, logits_ref[0, c])
    m32 = m.astype(jnp.float32)

    # Selected-class logit stays in the input dtype; LSE accumulates in f32.
    sel = x0
    acc = jnp.exp(x0.astype(jnp.float32) - m32)
    for c in range(1, num_classes):
        xc = logits_ref[0, c]
        sel = jnp.where(lab == c, xc, sel)
        acc = acc + jnp.exp(xc.astype(jnp.float32) - m32)

    return (m32 + jnp.log(acc)) - sel.astype(jnp.float32)


def _pixel_ce_kernel(logits_ref, labels_ref, loss_ref):
    loss_ref[0] = _ce_block(logits_ref, labels_ref)


def _sum_ce_kernel(hw, hw_pad, s_tile, logits_ref, labels_ref, psum_ref):
    """Warm-path kernel: per-block partial sum of CE, no per-pixel writeback."""
    ce = _ce_block(logits_ref, labels_ref)                # (S, 128) f32
    if hw != hw_pad:  # mask padded pixels (static branch)
        row0 = pl.program_id(1) * s_tile
        rows = row0 + jax.lax.broadcasted_iota(jnp.int32, ce.shape, 0)
        pix = rows * _LANES + jax.lax.broadcasted_iota(jnp.int32, ce.shape, 1)
        ce = jnp.where(pix < hw, ce, 0.0)
    psum_ref[0, 0] = jnp.sum(ce, axis=0, keepdims=True)   # (1, 128)


# ----------------------------------------------------------------------------
# Wrappers
# ----------------------------------------------------------------------------
def pixelwise_cross_entropy(logits_nchw, labels_nhw):
    """Raw per-pixel CE, flattened in (n, h, w) order, float32."""
    (logits, labels, n, c, hw, hw_pad, rows, s_tile,
     vmem_limit) = _prep_inputs(logits_nchw, labels_nhw)
    pp = rows // s_tile
    itemsize = jnp.dtype(logits.dtype).itemsize

    cost = pl.CostEstimate(
        flops=7 * n * hw_pad * c,
        transcendentals=n * hw_pad * (c + 1),
        bytes_accessed=n * hw_pad * (c * itemsize + 4 + 4),
    )
    loss = pl.pallas_call(
        _pixel_ce_kernel,
        out_shape=jax.ShapeDtypeStruct((n, rows, _LANES), jnp.float32),
        grid=(n, pp),
        in_specs=[
            pl.BlockSpec((1, c, s_tile, _LANES), lambda i, p: (i, 0, p, 0)),
            pl.BlockSpec((1, s_tile, _LANES), lambda i, p: (i, p, 0)),
        ],
        out_specs=pl.BlockSpec((1, s_tile, _LANES), lambda i, p: (i, p, 0)),
        compiler_params=pltpu.CompilerParams(
            dimension_semantics=("parallel", "parallel"),
            vmem_limit_bytes=vmem_limit,
        ),
        cost_estimate=cost,
    )(logits, labels)

    loss = loss.reshape(n, hw_pad)
    if hw_pad != hw:
        loss = loss[:, :hw]
    return loss.reshape(-1)


def mean_cross_entropy(logits_nchw, labels_nhw):
    """Mean CE over all pixels without materializing the per-pixel loss."""
    (logits, labels, n, c, hw, hw_pad, rows, s_tile,
     vmem_limit) = _prep_inputs(logits_nchw, labels_nhw)
    pp = rows // s_tile
    itemsize = jnp.dtype(logits.dtype).itemsize

    cost = pl.CostEstimate(
        flops=8 * n * hw_pad * c,
        transcendentals=n * hw_pad * (c + 1),
        bytes_accessed=n * hw_pad * (c * itemsize + 4) + n * pp * _LANES * 4,
    )
    partial = pl.pallas_call(
        functools.partial(_sum_ce_kernel, hw, hw_pad, s_tile),
        out_shape=jax.ShapeDtypeStruct((n, pp, 1, _LANES), jnp.float32),
        grid=(n, pp),
        in_specs=[
            pl.BlockSpec((1, c, s_tile, _LANES), lambda i, p: (i, 0, p, 0)),
            pl.BlockSpec((1, s_tile, _LANES), lambda i, p: (i, p, 0)),
        ],
        out_specs=pl.BlockSpec((1, 1, 1, _LANES), lambda i, p: (i, p, 0, 0)),
        compiler_params=pltpu.CompilerParams(
            dimension_semantics=("parallel", "parallel"),
            vmem_limit_bytes=vmem_limit,
        ),
        cost_estimate=cost,
    )(logits, labels)
    return jnp.sum(partial) / (n * hw)


@jax.jit
def _topk_mean(x, k):
    """Exact mean of the k largest entries of a non-negative 1-D array.

    Bit-level bisection (monotone int32 view of non-negative f32) finds the
    k-th largest value in 32 O(n) passes, then a masked sum finishes the mean.
    Avoids the O(n log n) sort of lax.top_k and any per-k recompiles.
    """
    x = x.astype(jnp.float32)
    k = jnp.asarray(k, jnp.int32)
    bits = jax.lax.bitcast_convert_type(x, jnp.int32)

    def body(_, carry):
        lo, hi = carry
        mid = lo + (hi - lo) // 2
        cnt = jnp.sum((bits >= mid).astype(jnp.int32))
        ok = cnt >= k
        return jnp.where(ok, mid, lo), jnp.where(ok, hi, mid)

    lo, _ = jax.lax.fori_loop(
        0, 32, body, (jnp.array(0, jnp.int32), jnp.array(0x7F800000, jnp.int32)))
    kth = jax.lax.bitcast_convert_type(lo, jnp.float32)

    gt = x > kth
    cnt_gt = jnp.sum(gt.astype(jnp.int32)).astype(jnp.float32)
    sum_gt = jnp.sum(jnp.where(gt, x, 0.0))
    kf = k.astype(jnp.float32)
    return (sum_gt + (kf - cnt_gt) * kth) / kf


class BootstrappedCE:
    """JAX/Pallas port of the PyTorch BootstrappedCE module."""

    def __init__(self, start_warm, end_warm, top_p=0.15):
        self.start_warm = start_warm
        self.end_warm = end_warm
        self.top_p = top_p

    def __call__(self, inp, target, it):
        # inp, target: (N, C, H, W); `it` is a Python int (same Python-level
        # branching as the original module). argmax of the target happens once
        # here so the kernels only stream 4 B/pixel of labels.
        labels = jnp.argmax(target, axis=1).astype(jnp.int32)   # (N, H, W)

        if it < self.start_warm:
            return mean_cross_entropy(inp, labels), 1.0

        raw_loss = pixelwise_cross_entropy(inp, labels)          # (N*H*W,) f32
        num_pixels = raw_loss.size
        if it > self.end_warm:
            this_p = self.top_p
        else:
            this_p = self.top_p + (1 - self.top_p) * (
                (self.end_warm - it) / (self.end_warm - self.start_warm))
        k = max(1, int(num_pixels * this_p))  # clamp avoids NaN when k == 0
        # TODO(synk): global top-p selection is data-dependent across the whole
        # loss vector and has no clean single-pass Pallas equivalent; it is done
        # with plain JAX reductions (exact bit-bisection) instead of lax.top_k.
        return _topk_mean(raw_loss, k), this_p


# ----------------------------------------------------------------------------
# Reference + self-test
# ----------------------------------------------------------------------------
def _reference_pixel_ce(inp, target):
    """Pure-JAX reference (same (n, h, w) flat order)."""
    n, c, h, w = inp.shape
    x = jnp.transpose(inp, (0, 2, 3, 1)).reshape(-1, c).astype(jnp.float32)
    t = jnp.transpose(target, (0, 2, 3, 1)).reshape(-1, c)
    cls = jnp.argmax(t, axis=-1)
    logp = jax.nn.log_softmax(x, axis=-1)
    return -jnp.take_along_axis(logp, cls[:, None], axis=-1)[:, 0]


if __name__ == "__main__":
    key = jax.random.PRNGKey(0)
    k1, k2 = jax.random.split(key)

    N, C, H, W = 2, 4, 16, 16
    x = jax.random.normal(k1, (N, C, H, W), dtype=jnp.float32)
    cls = jax.random.randint(k2, (N, H, W), 0, C)
    # one-hot target laid out NCHW, as the module's argmax(dim=1) expects
    target = jnp.transpose(jax.nn.one_hot(cls, C, dtype=jnp.float32),
                           (0, 3, 1, 2))

    loss_fn = BootstrappedCE(start_warm=100, end_warm=200, top_p=0.15)

    loss_warm, p_warm = loss_fn(x, target, it=10)    # warm: mean CE
    loss_boot, p_boot = loss_fn(x, target, it=150)   # ramp: top-57.5%
    loss_late, p_late = loss_fn(x, target, it=300)   # late: top-15%
    jax.block_until_ready((loss_warm, loss_boot, loss_late))

    # sanity checks against a pure-JAX reference
    raw_ref = _reference_pixel_ce(x, target)
    labels = jnp.argmax(target, axis=1).astype(jnp.int32)
    raw_kernel = pixelwise_cross_entropy(x, labels)
    assert raw_kernel.shape == raw_ref.shape
    assert jnp.allclose(raw_kernel, raw_ref, atol=1e-5, rtol=1e-5)
    assert jnp.allclose(loss_warm, jnp.mean(raw_ref), atol=1e-5, rtol=1e-5)

    k_boot = max(1, int(raw_ref.size * 0.575))
    k_late = max(1, int(raw_ref.size * 0.15))
    assert jnp.allclose(loss_boot, jnp.mean(jax.lax.top_k(raw_ref, k_boot)[0]),
                        atol=1e-5, rtol=1e-5)
    assert jnp.allclose(loss_late, jnp.mean(jax.lax.top_k(raw_ref, k_late)[0]),
                        atol=1e-5, rtol=1e-5)
    assert p_warm == 1.0 and abs(p_boot - 0.575) < 1e-9 and p_late == 0.15

    print("KERNEL_OK")
</pallas_src>

<mosaic_0001>
module attributes {stable_mosaic.version = 11 : i64} {
  func.func @_sum_ce_kernel(%arg0: i32, %arg1: i32, %arg2: memref<1x4x2x128xf32, #tpu.memory_space<vmem>>, %arg3: memref<1x2x128xi32, #tpu.memory_space<vmem>>, %arg4: memref<1x1x1x128xf32, #tpu.memory_space<vmem>>) attributes {dimension_semantics = [#tpu.dimension_semantics<parallel>, #tpu.dimension_semantics<parallel>], iteration_bounds = array<i64: 2, 1>, scalar_prefetch = 0 : i64, scratch_operands = 0 : i64, tpu.core_type = #tpu.core_type<tc>, window_params = [{transform_indices = @transform_0, window_bounds = array<i64: 1, 4, 2, 128>}, {transform_indices = @transform_1, window_bounds = array<i64: 1, 2, 128>}, {transform_indices = @transform_2, window_bounds = array<i64: 1, 1, 1, 128>}]} {
    %c0 = arith.constant 0 : index
    %c0_0 = arith.constant 0 : index
    %c0_1 = arith.constant 0 : index
    %0 = vector.load %arg3[%c0, %c0_0, %c0_1] : memref<1x2x128xi32, #tpu.memory_space<vmem>>, vector<1x2x128xi32>
    %1 = vector.shape_cast %0 : vector<1x2x128xi32> to vector<2x128xi32>
    %c0_2 = arith.constant 0 : index
    %c0_3 = arith.constant 0 : index
    %c0_4 = arith.constant 0 : index
    %c0_5 = arith.constant 0 : index
    %2 = vector.load %arg2[%c0_2, %c0_3, %c0_4, %c0_5] : memref<1x4x2x128xf32, #tpu.memory_space<vmem>>, vector<1x1x2x128xf32>
    %3 = vector.shape_cast %2 : vector<1x1x2x128xf32> to vector<2x128xf32>
    %c0_6 = arith.constant 0 : index
    %c1 = arith.constant 1 : index
    %c0_7 = arith.constant 0 : index
    %c0_8 = arith.constant 0 : index
    %4 = vector.load %arg2[%c0_6, %c1, %c0_7, %c0_8] : memref<1x4x2x128xf32, #tpu.memory_space<vmem>>, vector<1x1x2x128xf32>
    %5 = vector.shape_cast %4 : vector<1x1x2x128xf32> to vector<2x128xf32>
    %6 = arith.maximumf %3, %5 : vector<2x128xf32>
    %c0_9 = arith.constant 0 : index
    %c2 = arith.constant 2 : index
    %c0_10 = arith.constant 0 : index
    %c0_11 = arith.constant 0 : index
    %7 = vector.load %arg2[%c0_9, %c2, %c0_10, %c0_11] : memref<1x4x2x128xf32, #tpu.memory_space<vmem>>, vector<1x1x2x128xf32>
    %8 = vector.shape_cast %7 : vector<1x1x2x128xf32> to vector<2x128xf32>
    %9 = arith.maximumf %6, %8 : vector<2x128xf32>
    %c0_12 = arith.constant 0 : index
    %c3 = arith.constant 3 : index
    %c0_13 = arith.constant 0 : index
    %c0_14 = arith.constant 0 : index
    %10 = vector.load %arg2[%c0_12, %c3, %c0_13, %c0_14] : memref<1x4x2x128xf32, #tpu.memory_space<vmem>>, vector<1x1x2x128xf32>
    %11 = vector.shape_cast %10 : vector<1x1x2x128xf32> to vector<2x128xf32>
    %12 = arith.maximumf %9, %11 : vector<2x128xf32>
    %13 = arith.subf %3, %12 : vector<2x128xf32>
    %14 = math.exp %13 : vector<2x128xf32>
    %c0_15 = arith.constant 0 : index
    %c1_16 = arith.constant 1 : index
    %c0_17 = arith.constant 0 : index
    %c0_18 = arith.constant 0 : index
    %15 = vector.load %arg2[%c0_15, %c1_16, %c0_17, %c0_18] : memref<1x4x2x128xf32, #tpu.memory_space<vmem>>, vector<1x1x2x128xf32>
    %16 = vector.shape_cast %15 : vector<1x1x2x128xf32> to vector<2x128xf32>
    %c1_i32 = arith.constant 1 : i32
    %17 = vector.broadcast %c1_i32 : i32 to vector<2x128xi32>
    %18 = arith.cmpi eq, %1, %17 : vector<2x128xi32>
    %19 = arith.select %18, %16, %3 : vector<2x128xi1>, vector<2x128xf32>
    %20 = arith.subf %16, %12 : vector<2x128xf32>
    %21 = math.exp %20 : vector<2x128xf32>
    %22 = arith.addf %14, %21 : vector<2x128xf32>
    %c0_19 = arith.constant 0 : index
    %c2_20 = arith.constant 2 : index
    %c0_21 = arith.constant 0 : index
    %c0_22 = arith.constant 0 : index
    %23 = vector.load %arg2[%c0_19, %c2_20, %c0_21, %c0_22] : memref<1x4x2x128xf32, #tpu.memory_space<vmem>>, vector<1x1x2x128xf32>
    %24 = vector.shape_cast %23 : vector<1x1x2x128xf32> to vector<2x128xf32>
    %c2_i32 = arith.constant 2 : i32
    %25 = vector.broadcast %c2_i32 : i32 to vector<2x128xi32>
    %26 = arith.cmpi eq, %1, %25 : vector<2x128xi32>
    %27 = arith.select %26, %24, %19 : vector<2x128xi1>, vector<2x128xf32>
    %28 = arith.subf %24, %12 : vector<2x128xf32>
    %29 = math.exp %28 : vector<2x128xf32>
    %30 = arith.addf %22, %29 : vector<2x128xf32>
    %c0_23 = arith.constant 0 : index
    %c3_24 = arith.constant 3 : index
    %c0_25 = arith.constant 0 : index
    %c0_26 = arith.constant 0 : index
    %31 = vector.load %arg2[%c0_23, %c3_24, %c0_25, %c0_26] : memref<1x4x2x128xf32, #tpu.memory_space<vmem>>, vector<1x1x2x128xf32>
    %32 = vector.shape_cast %31 : vector<1x1x2x128xf32> to vector<2x128xf32>
    %c3_i32 = arith.constant 3 : i32
    %33 = vector.broadcast %c3_i32 : i32 to vector<2x128xi32>
    %34 = arith.cmpi eq, %1, %33 : vector<2x128xi32>
    %35 = arith.select %34, %32, %27 : vector<2x128xi1>, vector<2x128xf32>
    %36 = arith.subf %32, %12 : vector<2x128xf32>
    %37 = math.exp %36 : vector<2x128xf32>
    %38 = arith.addf %30, %37 : vector<2x128xf32>
    %39 = math.log %38 : vector<2x128xf32>
    %40 = arith.addf %12, %39 : vector<2x128xf32>
    %41 = arith.subf %40, %35 : vector<2x128xf32>
    %cst = arith.constant dense<0.000000e+00> : vector<128xf32>
    %42 = vector.multi_reduction <add>, %41, %cst [0] : vector<2x128xf32> to vector<128xf32>
    %43 = vector.shape_cast %42 : vector<128xf32> to vector<1x128xf32>
    %c0_27 = arith.constant 0 : index
    %c0_28 = arith.constant 0 : index
    %c0_29 = arith.constant 0 : index
    %c0_30 = arith.constant 0 : index
    %44 = vector.load %arg4[%c0_27, %c0_28, %c0_29, %c0_30] : memref<1x1x1x128xf32, #tpu.memory_space<vmem>>, vector<1x1x1x128xf32>
    %45 = vector.shape_cast %44 : vector<1x1x1x128xf32> to vector<1x128xf32>
    %46 = vector.shape_cast %43 : vector<1x128xf32> to vector<1x1x1x128xf32>
    tpu.vector_store %arg4[%c0_27, %c0_28, %c0_29, %c0_30], %46 {strides = array<i32>} : memref<1x1x1x128xf32, #tpu.memory_space<vmem>>, vector<1x1x1x128xf32>,
    return
  }
  func.func @transform_0(%arg0: i32, %arg1: i32) -> (i32, i32, i32, i32) {
    %c0_i32 = arith.constant 0 : i32
    %c0_i32_0 = arith.constant 0 : i32
    %c0_i32_1 = arith.constant 0 : i32
    return %arg0, %c0_i32, %arg1, %c0_i32_0 : i32, i32, i32, i32
  }
  func.func @transform_1(%arg0: i32, %arg1: i32) -> (i32, i32, i32) {
    %c0_i32 = arith.constant 0 : i32
    %c0_i32_0 = arith.constant 0 : i32
    return %arg0, %arg1, %c0_i32 : i32, i32, i32
  }
  func.func @transform_2(%arg0: i32, %arg1: i32) -> (i32, i32, i32, i32) {
    %c0_i32 = arith.constant 0 : i32
    %c0_i32_0 = arith.constant 0 : i32
    %c0_i32_1 = arith.constant 0 : i32
    return %arg0, %arg1, %c0_i32, %c0_i32_0 : i32, i32, i32, i32
  }
}

</mosaic_0001>

<bundles_post_ra>
// kernel: tpu_custom_call.1
= control target key start
LH: loop header
LB: loop body
LE: loop exit
PB: predicated region body
PF: predicated region fallthrough
CT: control target
= control target key end

     0   :  { %7 = vsyncpa [#allocation3], 0  ;;  %s860_s0 = inlined_call_operand.hbm [shape: f32[2,4,2,128], index: 0, kind: input, shape index: {}]   ;;  %s861_s1 = inlined_call_operand.hbm [shape: s32[2,2,128], index: 1, kind: input, shape index: {}]   ;;  %s862_s2 = inlined_call_operand.hbm [shape: f32[2,1,1,128], index: 2, kind: output, shape index: {}]  }
   0x1   :  { %9 = vsyncpa [#allocation3 + $0x1], 0 }
   0x2   :  { %10 = vsyncpa [#allocation6], 0 }
   0x3   :  { %12 = vsyncpa [#allocation6 + $0x1], 0 }
   0x4   :  { %13 = vsyncpa [#allocation4], 0 }
   0x5   :  { %15 = vsyncpa [#allocation4 + $0x1], 0  ;;  %s644_s9 = smov 0   ;;  %s646_s10 = smov 0  }
   0x6   :  { %s648_s11 = smov 0   ;;  %s650_s12 = smov 0  }
   0x7   :  { %s652_s13 = smov 0   ;;  %s654_s14 = smov 0  }
   0x8 LB: > { %s378_s15 = sadd.s32 4294967295, %s622_s14   ;;  %s379_s16 = sadd.s32 4294967294, %s622_s14   ;;  %s622_s14 = sphi %s654_s14, %s21_s14   ;;  %s618_s13 = sphi %s652_s13, %s881_s13   ;;  %s614_s12 = sphi %s650_s12, %s880_s12   ;;  %s610_s11 = sphi %s648_s11, %s879_s11   ;;  %s606_s10 = sphi %s646_s10, %s878_s10   ;;  %s602_s9 = sphi %s644_s9, %s877_s9  }
   0x9   : > { %s33_s17 = sadd.s32 1, %s618_s13  ;;  %s42_s18 = sadd.s32 1, %s610_s11 }
   0xa   : > { %p35_p0 = scmp.ge.s32.totalorder %s33_s17, 2  ;;  %p49_p1 = scmp.ne.s32.totalorder %s610_s11, %s606_s10 }
   0xb   : > { %p50_p2 = scmp.eq.s32.totalorder %s622_s14, 0  ;;  %p55_p3 = scmp.ne.s32.totalorder %s606_s10, %s602_s9 }
   0xc   : > { %s883_s17 = smov (%p35_p0, %s33_s17), 0  ;;  %p56_p5 = scmp.eq.s32.totalorder %s378_s15, 0 }
   0xd   : > { %p685_p4 = por %p50_p2, %p49_p1  ;;  %s37_s20 = ssub.s32 %s618_s13, %s883_s17 }
   0xe   : > { %p109_p6 = scmp.eq.s32.totalorder %s378_s15, 1  ;;  %p40_p7 = scmp.eq.s32.totalorder %s37_s20, 0 }
   0xf   : > { %p691_p8 = por %p56_p5, %p55_p3  ;;  %p115_p10 = scmp.eq.s32.totalorder %s379_s16, 1 }
  0x10   : > { %p695_p9 = por %p109_p6, %p49_p1  ;;  %p414_p13 = scmp.lt.s32.totalorder %s622_s14, 2 }
  0x11   : > { %s866_s21 = scalar_select %p691_p8, 1, 0 }
  0x12   : > { %s867_s22 = scalar_select %p695_p9, 1, 0 }
  0x13   : > { %s700_s23 = scalar_select %p40_p7, %s610_s11, %s42_s18  }
  0x14   : > { %p702_p11 = por %p115_p10, %p55_p3  ;;  %s709_s25 = sand.u32 1, %s610_s11  }
  0x15   : > { %s382_s26 = sshll.u32 %s709_s25, 3  ;;  %s396_s27 = sshll.u32 %s618_s13, 7 }
  0x16   : > { %s868_s24 = scalar_select %p702_p11, 1, 0 }
  0x17   : > { %s716_s30 = scalar_lea.hbm %s860_s0, %s396_s27  ;;  %s139_s3 = scalar_lea.vmem [#allocation2], %s382_s26 }
  0x18   : > { %s147_s4 = sshll.u32 %s139_s3, 4  ;;  %p722_p0 = pnand %p414_p13, %p685_p4  ;;  %s718_s4 = int_to_ptr.vmem [resolvable:$true] %s147_s4 }
  0x19   : > { %s136_s6 = scalar_lea.sflag [#allocation3], %s709_s25  ;;  %s476_s7 = scalar_lea.hbm %s716_s30, 128 }
  0x1a   : > { %p477_p2 = scmp.ne.s32.totalorder %s716_s30, %s476_s7  ;;  %p478_p3 = pneg %p722_p0 }
  0x1b   : > { %s481_s16 = scalar_lea.hbm %s860_s0, 256  ;;  %p482_p4 = scmp.lt.u32.totalorder %s716_s30, %s860_s0 }
  0x1c   : > { %p479_p5 = pnand %p478_p3, %p477_p2  ;;  %p483_p7 = scmp.lt.u32.totalorder %s481_s16, %s476_s7 }
  0x1d   : > { %p485_p13 = scmp.lt.u32.totalorder %s476_s7, %s716_s30 }
  0x1e   : > { %p480_p6 = pneg %p479_p5  ;;  %p484_p10 = por %p483_p7, %p482_p4 }
  0x20   : > { %p486_p12 = por %p485_p13, %p484_p10 }
  0x22   : > { %p487_p1 = pnand %p486_p12, %p480_p6 }
  0x24   : > { %490 = shalt.err (!%p487_p1)
}
  0x25   : > { %s491_s20 = scalar_lea.vmem %s718_s4, 128  ;;  %s624_s26 = smov [#allocation2]  }
  0x26   : > { %p492_p2 = scmp.ne.s32.totalorder %s718_s4, %s491_s20  ;;  %s496_s27 = sshll.u32 %s624_s26, 4  ;;  %s497_s27 = int_to_ptr.vmem [resolvable:$false] %s496_s27 }
  0x27   : > { %s498_s28 = scalar_lea.vmem %s497_s27, 256  ;;  %p499_p9 = scmp.lt.s32.totalorder %s718_s4, %s497_s27 }
  0x28   : > { %p494_p5 = pnand %p492_p2, %p478_p3  ;;  %p500_p4 = scmp.lt.s32.totalorder %s498_s28, %s491_s20 }
  0x2a   : > { %p495_p11 = pneg %p494_p5  ;;  %p501_p7 = por %p500_p4, %p499_p9 }
  0x2c   : > { %p502_p10 = pnand %p501_p7, %p495_p11 }
  0x2e   : > { %505 = shalt.err (!%p502_p10)
}
  0x2f   : > { %s625_s29 = smov 32   ;;  %s626_s3 = smov 2  }
  0x30   : > { %406 = dma.hbm_to_vmem [thread:$0]  (!%p722_p0), %s716_s30, 128, %s718_s4, %s136_s6, %s625_s29, %s625_s29, %s626_s3  }
  0x31   : > { %p174_p12 = scmp.lt.s32.totalorder %s622_s14, 3  ;;  %s385_s7 = sshll.u32 %s709_s25, 1 }
  0x32   : > { %s386_s8 = sshll.u32 %s618_s13, 5  ;;  %p870_p9 = scmp.ge.s32.totalorder %s622_s14, 1 }
  0x33   : > { %s767_s19 = scalar_lea.hbm %s861_s1, %s386_s8  ;;  %s161_s20 = scalar_lea.vmem [#allocation5], %s385_s7 }
  0x34   : > { %p760_p11 = pnand %p870_p9, %p174_p12  ;;  %s169_s26 = sshll.u32 %s161_s20, 4  ;;  %s170_s26 = int_to_ptr.vmem [resolvable:$true] %s169_s26 }
  0x35   : > { %s158_s30 = scalar_lea.sflag [#allocation6], %s709_s25  ;;  %s506_s4 = scalar_lea.hbm %s767_s19, 32 }
  0x36   : > { %s871_s15 = scalar_select %p760_p11, 1, 0 }
  0x37   : > { %p507_p1 = scmp.ne.s32.totalorder %s767_s19, %s506_s4  ;;  %s511_s28 = scalar_lea.hbm %s861_s1, 64 }
  0x38   : > { %p512_p2 = scmp.lt.u32.totalorder %s767_s19, %s861_s1  ;;  %p513_p5 = scmp.lt.u32.totalorder %s511_s28, %s506_s4 }
  0x39   : > { %p509_p6 = pnand %p507_p1, %p478_p3  ;;  %p515_p7 = scmp.lt.u32.totalorder %s506_s4, %s767_s19 }
  0x3a   : > { %p514_p4 = por %p513_p5, %p512_p2 }
  0x3b   : > { %p510_p13 = pneg %p509_p6 }
  0x3c   : > { %p516_p10 = por %p515_p7, %p514_p4 }
  0x3e   : > { %p517_p12 = pnand %p516_p10, %p510_p13 }
  0x40   : > { %520 = shalt.err (!%p517_p12)
}
  0x41   : > { %s521_s25 = scalar_lea.vmem %s170_s26, 32  ;;  %s627_s7 = smov [#allocation5]  }
  0x42   : > { %p522_p9 = scmp.ne.s32.totalorder %s170_s26, %s521_s25  ;;  %s526_s8 = sshll.u32 %s627_s7, 4  ;;  %s527_s8 = int_to_ptr.vmem [resolvable:$false] %s526_s8 }
  0x43   : > { %s528_s16 = scalar_lea.vmem %s527_s8, 64  ;;  %p529_p8 = scmp.lt.s32.totalorder %s170_s26, %s527_s8 }
  0x44   : > { %p524_p1 = pnand %p522_p9, %p478_p3  ;;  %p530_p11 = scmp.lt.s32.totalorder %s528_s16, %s521_s25 }
  0x46   : > { %p525_p6 = pneg %p524_p1  ;;  %p531_p2 = por %p530_p11, %p529_p8 }
  0x48   : > { %p532_p5 = pnand %p531_p2, %p525_p6 }
  0x4a   : > { %535 = shalt.err (!%p532_p5)
}
  0x4b   : > { %409 = dma.hbm_to_vmem [thread:$0]  (!%p722_p0), %s767_s19, 32, %s170_s26, %s158_s30  }
  0x4c   : > { %p872_p13 = scmp.ne.s32.totalorder %s871_s15, 0 }
  0x4d   : > { %s792_s18 = sand.u32 (!%p872_p13), 1, %s606_s10   ;;  %p873_p3 = scmp.ne.s32.totalorder (!%p872_p13), %s866_s21, 0 }
  0x4e   : > { %178 = sbr.rel (%p872_p13) target bundleno = 162 (0xa2), region = 28  ;;  %s388_s20 = sshll.u32 (!%p872_p13), %s792_s18, 3 }
  0x4f   : > { %s181_s4 = scalar_lea.sflag (!%p872_p13), [#allocation3], %s792_s18  ;;  %s184_s6 = scalar_lea.vmem (!%p872_p13), [#allocation2], %s388_s20 }
  0x55   : > { %589 = dma.done.wait (%p873_p3), %s181_s4, 128  }
  0x56   : > { %591 = vsyncadd (%p873_p3), %s181_s4, 4294967168  ;;  %s389_s5 = sshll.u32 %s792_s18, 1  ;;  %s190_s15 = scalar_lea.sflag [#allocation6], %s792_s18 }
  0x57   : > { %s193_s19 = scalar_lea.vmem [#allocation5], %s389_s5 }
  0x58   : > { %593 = dma.done.wait (%p873_p3), %s190_s15, 32  }
  0x59   : > { %595 = vsyncadd (%p873_p3), %s190_s15, 4294967264  ;;  %v219_v0 = vld [vmem:[%s184_s6] sm:$0x3]  ;;  %v390_v1 = vld [vmem:[%s184_s6 + $0x2] sm:$0x3]  ;;  %vm254_vm3 = vcmask 1041408  }
  0x5a   : > { %v222_v2 = vmax.f32 %v219_v0, %v390_v1  ;;  %v391_v3 = vld [vmem:[%s184_s6 + $0x4] sm:$0x3]  ;;  %v392_v4 = vld [vmem:[%s184_s6 + $0x6] sm:$0x3]  ;;  %v218_v22 = vld [vmem:[%s193_s19] sm:$0x3] }
  0x5b   : > { %vm232_vm0 = vcmp.eq.s32.totalorder %v218_v22, 1  ;;  %vm238_vm1 = vcmp.eq.s32.totalorder %v218_v22, 2  ;;  %vm244_vm2 = vcmp.eq.s32.totalorder %v218_v22, 3  ;;  %s217_s21 = scalar_lea.vmem [#allocation7], %s792_s18  ;;  %s393_s30 = sshll.u32 %s614_s12, 4 }
  0x5c   : > { %v225_v5 = vmax.f32 %v222_v2, %v391_v3  ;;  %v233_v23 = vsel %vm232_vm0, %v390_v1, %v219_v0  ;;  %s277_s26 = sshll.u32 %s217_s21, 4  ;;  %s813_s29 = scalar_lea.hbm %s862_s2, %s393_s30  ;;  %s808_s26 = int_to_ptr.vmem [resolvable:$true] %s277_s26 }
  0x5d   : > { %v239_v24 = vsel %vm238_vm1, %v391_v3, %v233_v23  ;;  %s264_s3 = scalar_lea.sflag [#allocation4], %s792_s18  ;;  %s536_s25 = scalar_lea.vmem %s808_s26, 16 }
  0x5e   : > { %v228_v6 = vmax.f32 %v225_v5, %v392_v4  ;;  %v245_v27 = vsel %vm244_vm2, %v392_v4, %v239_v24  ;;  %p537_p8 = scmp.ne.s32.totalorder %s808_s26, %s536_s25  ;;  %p874_p0 = scmp.ne.s32.totalorder %s867_s22, 0 }
  0x5f   : > { %s628_s12 = smov [#allocation7]  }
  0x60   : > { %v229_v7 = vsub.f32 %v219_v0, %v228_v6  ;;  %v234_v8 = vsub.f32 %v390_v1, %v228_v6  ;;  %v240_v9 = vsub.f32 %v391_v3, %v228_v6  ;;  %v246_v10 = vsub.f32 %v392_v4, %v228_v6  ;;  %p538_p11 = pnand %p537_p8, %p874_p0  ;;  %s540_s7 = sshll.u32 %s628_s12, 4  ;;  %s541_s7 = int_to_ptr.vmem [resolvable:$false] %s540_s7 }
  0x61   : > { %s542_s8 = scalar_lea.vmem %s541_s7, 32  ;;  %p543_p7 = scmp.lt.s32.totalorder %s808_s26, %s541_s7 }
  0x62   : > { %v230_v11 = vmul.f32 1.442695, %v229_v7  ;;  %v235_v12 = vmul.f32 1.442695, %v234_v8  ;;  %v241_v13 = vmul.f32 1.442695, %v240_v9  ;;  %p539_p4 = pneg %p538_p11  ;;  %p544_p10 = scmp.lt.s32.totalorder %s542_s8, %s536_s25 }
  0x63   : > { %v247_v14 = vmul.f32 1.442695, %v246_v10 }
  0x64   : > { %466 = vpow2.f32 %v230_v11  ;;  %p545_p12 = por %p544_p10, %p543_p7 }
  0x65   : > { %468 = vpow2.f32 %v235_v12 }
  0x66   : > { %470 = vpow2.f32 %v241_v13  ;;  %p546_p9 = pnand %p545_p12, %p539_p4 }
  0x67   : > { %472 = vpow2.f32 %v247_v14 }
  0x6e   : > { %v467_v15 = vpop.eup %466 }
  0x6f   : > { %v469_v16 = vpop.eup %468 }
  0x70   : > { %v471_v17 = vpop.eup %470  ;;  %v237_v18 = vadd.f32 %v469_v16, %v467_v15 }
  0x71   : > { %v473_v19 = vpop.eup %472 }
  0x72   : > { %v243_v20 = vadd.f32 %v471_v17, %v237_v18 }
  0x74   : > { %v249_v21 = vadd.f32 %v473_v19, %v243_v20 }
  0x76   : > { %474 = vlog2.f32 %v249_v21 }
  0x80   : > { %v475_v25 = vpop.eup %474 }
  0x81   : > { %v251_v26 = vmul.f32 0.6931472, %v475_v25 }
  0x83   : > { %v252_v28 = vadd.f32 %v251_v26, %v228_v6 }
  0x85   : > { %v253_v29 = vsub.f32 %v252_v28, %v245_v27 }
  0x87   : > { %v255_v30 = vsel %vm254_vm3, %v253_v29, 0.0 }
  0x88   : > { %v256_v31 = vrot.slane %v255_v30, 4 }
  0x8a   : > { %v257_v32 = vadd.f32 %v256_v31, %v255_v30 }
  0x8c   : > { %v258_v33 = vrot.slane %v257_v32, 2 }
  0x8e   : > { %v259_v34 = vadd.f32 %v258_v33, %v257_v32 }
  0x90   : > { %v260_v35 = vrot.slane %v259_v34, 1 }
  0x92   : > { %v261_v36 = vadd.f32 %v260_v35, %v259_v34 }
  0x94   : > { %262 = vst [vmem:[%s217_s21] sm:$0x1] %v261_v36 }
  0x95   : > { %549 = shalt.err (!%p546_p9)
}
  0x96   : > { %s550_s16 = scalar_lea.hbm %s813_s29, 16  ;;  %s554_s4 = scalar_lea.hbm %s862_s2, 32 }
  0x97   : > { %p551_p1 = scmp.ne.s32.totalorder %s813_s29, %s550_s16  ;;  %p555_p5 = scmp.lt.u32.totalorder %s813_s29, %s862_s2 }
  0x98   : > { %p556_p13 = scmp.lt.u32.totalorder %s554_s4, %s550_s16  ;;  %p558_p8 = scmp.lt.u32.totalorder %s550_s16, %s813_s29 }
  0x99   : > { %p552_p6 = pnand %p551_p1, %p874_p0 }
  0x9a   : > { %p557_p3 = por %p556_p13, %p555_p5 }
  0x9b   : > { %p553_p2 = pneg %p552_p6 }
  0x9c   : > { %p559_p11 = por %p558_p8, %p557_p3 }
  0x9e   : > { %p560_p4 = pnand %p559_p11, %p553_p2 }
  0xa0   : > { %563 = shalt.err (!%p560_p4)
}
  0xa1   : > { %401 = dma.vmem_to_hbm [thread:$0]  (%p874_p0), %s808_s26, 16, %s813_s29, %s264_s3  }
  0xa2 PF: > { %s289_s15 = sand.u32 1, %s602_s9   ;;  %p875_p7 = scmp.ne.s32.totalorder %s868_s24, 0 }
  0xa3   : > { %p876_p10 = scmp.ge.s32.totalorder %s622_s14, 2  ;;  %s290_s19 = scalar_lea.sflag [#allocation4], %s289_s15 }
  0xa5   : > { %p411_p12 = pnand %p876_p10, %p875_p7 }
  0xa7   : > { %597 = dma.done.wait (!%p411_p12), %s290_s19, 16  }
  0xa8   : > { %599 = vsyncadd (!%p411_p12), %s290_s19, 4294967280  ;;  %s21_s14 = sadd.s32 1, %s622_s14   ;;  %s877_s9 = smov %s606_s10 }
  0xa9   : > { %p18_p9 = scmp.ge.s32.totalorder %s21_s14, 4   ;;  %s878_s10 = smov %s610_s11 }
  0xaa   : > { %s879_s11 = smov %s700_s23  ;;  %s880_s12 = smov %s618_s13 }
  0xab   : > { %s881_s13 = smov %s883_s17  ;;  %20 = sbr.rel (!%p18_p9) target bundleno = 8 (0x8), region = 89 }
  0xb2   :  { %294 = vsyncpa [#allocation3], 1 }
  0xb3   :  { %296 = vsyncpa [#allocation3 + $0x1], 1 }
  0xb4   :  { %297 = vsyncpa [#allocation6], 1 }
  0xb5   :  { %299 = vsyncpa [#allocation6 + $0x1], 1 }
  0xb6   :  { %300 = vsyncpa [#allocation4], 1 }
  0xb7   :  { %302 = vsyncpa [#allocation4 + $0x1], 1 }

</bundles_post_ra>
